<compile_context>
chip_gen: v7x
topology: tpu7x:2x2x1
jax: 0.10.0
libtpu: 0.0.40
codegen_flags: <defaults>
</compile_context>

<pallas_src>
import functools
import math

import jax
import jax.numpy as jnp
from jax.experimental import pallas as pl
from jax.experimental.pallas import tpu as pltpu


def _make_kernel(apply_dropout):
    def kernel(embed_ref, ws_ref, vecs_ref, *rest):
        if apply_dropout:
            mask_ref, out_ref = rest
        else:
            (out_ref,) = rest

        TB, N, D = embed_ref.shape
        M = TB * N

        x = embed_ref[...].reshape(M, D)                      # (M, D) f32, flattened tile

        # packed (8, D) vector block: rows = [b1, b2, bfc, gamma, beta, pad, pad, pad]
        b1 = vecs_ref[0:1, :]
        b2 = vecs_ref[1:2, :]
        bfc = vecs_ref[2:3, :]
        gamma = vecs_ref[3:4, :]
        beta = vecs_ref[4:5, :]

        # ---- query_input = F.normalize(embed, p=2, dim=2)  (eps = 1e-12) ----
        nrm = jnp.sqrt(jnp.sum(x * x, axis=-1, keepdims=True))
        q = x / jnp.maximum(nrm, 1e-12)

        # ---- feat_corr = q @ q^T : one consolidated MXU push over the whole tile.
        #      Cross-batch entries (TB > 1) are masked to -inf before the argmax so the
        #      result is identical to the per-batch matmul of the reference. ----
        corr = jax.lax.dot_general(q, q, (((1,), (1,)), ((), ())),
                                   preferred_element_type=jnp.float32)       # (M, M)
        colI = jax.lax.broadcasted_iota(jnp.int32, (M, M), 1)
        if TB > 1:
            rowI = jax.lax.broadcasted_iota(jnp.int32, (M, M), 0)
            corr = jnp.where((rowI // N) == (colI // N), corr, -jnp.inf)

        # ---- init_adj_attention (layer=1 -> k=1): H = one-hot(argmax corr) per row.
        #      Ties break to the lowest index (torch.topk tie order is unspecified). ----
        mx = jnp.max(corr, axis=-1, keepdims=True)
        first_idx = jnp.min(jnp.where(corr >= mx, colI, M), axis=-1, keepdims=True)  # (M,1)
        H = (colI == first_idx).astype(jnp.float32)                                  # (M, M)

        # ---- _generate_G_from_H (reference uses ELEMENTWISE '*' of the diagonal
        #      degree matrices with H / H^T, so G is diagonal). With one-hot rows the
        #      row-sums DV are identically 1, hence
        #        diag(G)[i] = (1/1.0001) * [first_idx[i] == i] * invDE[i]. ----
        ones_col = jnp.ones((M, 1), jnp.float32)
        DE = jax.lax.dot_general(H, ones_col, (((0,), (0,)), ((), ())),
                                 preferred_element_type=jnp.float32)         # (M,1) col sums
        invde = (1.0 / (DE + 1e-4)) * (DE > 0).astype(jnp.float32)
        rowids = jax.lax.broadcasted_iota(jnp.int32, (M, 1), 0)
        Hd = (first_idx == rowids).astype(jnp.float32)
        g = (1.0 / 1.0001) * Hd * invde                                      # diag(G), (M,1)

        # ---- weight matmuls: bf16 operands, f32 accumulate ----
        xb = x.astype(jnp.bfloat16)
        w1 = ws_ref[0]
        wfc1 = ws_ref[1]
        w2 = ws_ref[2]
        wfc2 = ws_ref[3]

        # HGNN: hgc1 -> relu -> dropout(p=0.5) -> hgc2   (G @ v == g * v exactly)
        h = g * (jnp.dot(xb, w1, preferred_element_type=jnp.float32) + b1)
        h = jnp.maximum(h, 0.0)
        if apply_dropout:
            # TODO(synk): torch's dropout RNG stream is not reproducible; an equivalent
            # Bernoulli(0.5) keep-mask (pre-scaled by 1/(1-p)) is streamed in because the
            # TPU hardware PRNG has no interpret/CPU lowering in this sandbox.
            h = h * mask_ref[...].reshape(M, D)
        h = g * (jnp.dot(h.astype(jnp.bfloat16), w2, preferred_element_type=jnp.float32) + b2)

        # fc: Linear(concat([embed, h], -1)) == x @ Wfc1 + h @ Wfc2 + bfc
        y = (jnp.dot(xb, wfc1, preferred_element_type=jnp.float32)
             + jnp.dot(h.astype(jnp.bfloat16), wfc2, preferred_element_type=jnp.float32)
             + bfc)

        # LayerNorm(hidden_dim), eps=1e-5, affine
        mu = jnp.mean(y, axis=-1, keepdims=True)
        var = jnp.mean((y - mu) * (y - mu), axis=-1, keepdims=True)
        yn = (y - mu) * jax.lax.rsqrt(var + 1e-5)
        out_ref[...] = (yn * gamma + beta).reshape(TB, N, D)

    return kernel


def hypergraph_head(embed, params, *, dropout_mask=None, tb=1):
    """embed: (B, N, D) f32. params: ws (4, D, D) bf16 = [W1, Wfc1, W2, Wfc2],
    vecs (8, D) f32 = rows [b1, b2, bfc, gamma, beta, pad...].
    dropout_mask: optional (B, N, D) f32 keep-mask pre-scaled by 1/(1-p); None == eval."""
    B, N, D = embed.shape
    assert B % tb == 0
    apply_dropout = dropout_mask is not None

    tile_spec = pl.BlockSpec((tb, N, D), lambda b: (b, 0, 0))
    ws_spec = pl.BlockSpec(params["ws"].shape, lambda b: (0, 0, 0))      # VMEM-resident
    vecs_spec = pl.BlockSpec(params["vecs"].shape, lambda b: (0, 0))     # VMEM-resident

    in_specs = [tile_spec, ws_spec, vecs_spec]
    operands = [embed, params["ws"], params["vecs"]]
    if apply_dropout:
        in_specs.append(pl.BlockSpec((tb, N, D), lambda b: (b, 0, 0)))
        operands.append(dropout_mask)

    tile_io = tb * N * D * 4
    weight_bytes = params["ws"].size * params["ws"].dtype.itemsize + params["vecs"].size * 4
    per_step_bytes = (2 + (2 if apply_dropout else 0) + 2) * tile_io + 2 * weight_bytes
    vmem_limit = int(min(max(4 * per_step_bytes, 4 << 20), 32 << 20))

    M = tb * N
    flops = (B // tb) * (2 * M * M * D + 2 * M * M + 8 * M * D * D + 16 * M * D)
    bytes_accessed = (2 + (1 if apply_dropout else 0)) * B * N * D * 4 + weight_bytes

    return pl.pallas_call(
        _make_kernel(apply_dropout),
        out_shape=jax.ShapeDtypeStruct((B, N, D), jnp.float32),
        grid=(B // tb,),
        in_specs=in_specs,
        out_specs=pl.BlockSpec((tb, N, D), lambda b: (b, 0, 0)),
        compiler_params=pltpu.CompilerParams(
            dimension_semantics=("parallel",),
            vmem_limit_bytes=vmem_limit),
        cost_estimate=pl.CostEstimate(flops=flops, transcendentals=4 * B * N,
                                      bytes_accessed=bytes_accessed),
    )(*operands)


def init_params(key, hidden_dim):
    D = hidden_dim
    ks = jax.random.split(key, 6)
    stdv = 1.0 / math.sqrt(D)                      # HGNN_conv reset_parameters
    w1 = jax.random.uniform(ks[0], (D, D), jnp.float32, -stdv, stdv)
    b1 = jax.random.uniform(ks[1], (1, D), jnp.float32, -stdv, stdv)
    w2 = jax.random.uniform(ks[2], (D, D), jnp.float32, -stdv, stdv)
    b2 = jax.random.uniform(ks[3], (1, D), jnp.float32, -stdv, stdv)
    # nn.Linear(fusion_dim=2D, D): uniform(-1/sqrt(in), 1/sqrt(in)); stored transposed.
    stdv_fc = 1.0 / math.sqrt(2 * D)
    wfc_t = jax.random.uniform(ks[4], (2 * D, D), jnp.float32, -stdv_fc, stdv_fc)
    bfc = jax.random.uniform(ks[5], (1, D), jnp.float32, -stdv_fc, stdv_fc)
    gamma = jnp.ones((1, D), jnp.float32)          # LayerNorm affine init
    beta = jnp.zeros((1, D), jnp.float32)
    wfc1, wfc2 = wfc_t[:D], wfc_t[D:]
    return {
        # bf16 weights: MXU-native fast path + half the weight DMA traffic.
        "ws": jnp.stack([w1, wfc1, w2, wfc2], axis=0).astype(jnp.bfloat16),   # (4, D, D)
        "vecs": jnp.concatenate(
            [b1, b2, bfc, gamma, beta, jnp.zeros((3, D), jnp.float32)], axis=0),  # (8, D)
    }


if __name__ == "__main__":
    B, N, D = 2, 8, 32          # batch, actors, hidden_dim (layer = 1)
    key = jax.random.PRNGKey(0)
    k_embed, k_params, k_drop = jax.random.split(key, 3)

    embed = jax.random.normal(k_embed, (B, N, D), jnp.float32)
    params = init_params(k_params, D)

    # F.dropout(x, 0.5) (training=True default in the reference): keep-mask * 1/(1-p).
    keep = jax.random.bernoulli(k_drop, 0.5, (B, N, D))
    dropout_mask = keep.astype(jnp.float32) * 2.0

    out = hypergraph_head(embed, params, dropout_mask=dropout_mask, tb=1)
    jax.block_until_ready(out)
    assert out.shape == (B, N, D) and out.dtype == jnp.float32
    print("KERNEL_OK")
</pallas_src>

<mosaic_0001>
module attributes {stable_mosaic.version = 11 : i64} {
  func.func @kernel(%arg0: i32, %arg1: memref<1x8x32xf32, #tpu.memory_space<vmem>>, %arg2: memref<4x32x32xbf16, #tpu.memory_space<vmem>>, %arg3: memref<8x32xf32, #tpu.memory_space<vmem>>, %arg4: memref<1x8x32xf32, #tpu.memory_space<vmem>>, %arg5: memref<1x8x32xf32, #tpu.memory_space<vmem>>) attributes {dimension_semantics = [#tpu.dimension_semantics<parallel>], iteration_bounds = array<i64: 2>, scalar_prefetch = 0 : i64, scratch_operands = 0 : i64, tpu.core_type = #tpu.core_type<tc>, window_params = [{transform_indices = @transform_0, window_bounds = array<i64: 1, 8, 32>}, {pipeline_mode = #tpu.pipeline_mode<synchronous>, transform_indices = @transform_1, window_bounds = array<i64: 4, 32, 32>}, {pipeline_mode = #tpu.pipeline_mode<synchronous>, transform_indices = @transform_2, window_bounds = array<i64: 8, 32>}, {transform_indices = @transform_3, window_bounds = array<i64: 1, 8, 32>}, {transform_indices = @transform_4, window_bounds = array<i64: 1, 8, 32>}]} {
    %c0 = arith.constant 0 : index
    %c0_0 = arith.constant 0 : index
    %c0_1 = arith.constant 0 : index
    %0 = vector.load %arg1[%c0, %c0_0, %c0_1] : memref<1x8x32xf32, #tpu.memory_space<vmem>>, vector<1x8x32xf32>
    %1 = vector.shape_cast %0 : vector<1x8x32xf32> to vector<8x32xf32>
    %c0_2 = arith.constant 0 : index
    %c0_3 = arith.constant 0 : index
    %2 = vector.load %arg3[%c0_2, %c0_3] : memref<8x32xf32, #tpu.memory_space<vmem>>, vector<1x32xf32>
    %c1 = arith.constant 1 : index
    %c0_4 = arith.constant 0 : index
    %3 = vector.load %arg3[%c1, %c0_4] : memref<8x32xf32, #tpu.memory_space<vmem>>, vector<1x32xf32>
    %c2 = arith.constant 2 : index
    %c0_5 = arith.constant 0 : index
    %4 = vector.load %arg3[%c2, %c0_5] : memref<8x32xf32, #tpu.memory_space<vmem>>, vector<1x32xf32>
    %c3 = arith.constant 3 : index
    %c0_6 = arith.constant 0 : index
    %5 = vector.load %arg3[%c3, %c0_6] : memref<8x32xf32, #tpu.memory_space<vmem>>, vector<1x32xf32>
    %c4 = arith.constant 4 : index
    %c0_7 = arith.constant 0 : index
    %6 = vector.load %arg3[%c4, %c0_7] : memref<8x32xf32, #tpu.memory_space<vmem>>, vector<1x32xf32>
    %7 = arith.mulf %1, %1 : vector<8x32xf32>
    %cst = arith.constant dense<0.000000e+00> : vector<8xf32>
    %8 = vector.multi_reduction <add>, %7, %cst [1] : vector<8x32xf32> to vector<8xf32>
    %9 = vector.shape_cast %8 : vector<8xf32> to vector<8x1xf32>
    %10 = math.sqrt %9 : vector<8x1xf32>
    %cst_8 = arith.constant 9.99999996E-13 : f32
    %11 = vector.broadcast %cst_8 : f32 to vector<8x1xf32>
    %12 = arith.maximumf %10, %11 : vector<8x1xf32>
    %13 = vector.broadcast %12 : vector<8x1xf32> to vector<8x32xf32>
    %14 = arith.divf %1, %13 : vector<8x32xf32>
    %cst_9 = arith.constant dense<0.000000e+00> : vector<8x8xf32>
    %15 = tpu.matmul %14, %14, %cst_9 {dimension_numbers = #tpu.dot_dimension_numbers<[1], [1], [0], [0], [0, 0, 1, 0], [], []>} : vector<8x32xf32>, vector<8x32xf32>, vector<8x8xf32> -> vector<8x8xf32>
    %16 = tpu.iota {dimensions = array<i32: 1>} : vector<8x8xi32>
    %cst_10 = arith.constant dense<0xFF800000> : vector<8xf32>
    %17 = vector.multi_reduction <maximumf>, %15, %cst_10 [1] : vector<8x8xf32> to vector<8xf32>
    %18 = vector.shape_cast %17 : vector<8xf32> to vector<8x1xf32>
    %19 = vector.broadcast %18 : vector<8x1xf32> to vector<8x8xf32>
    %20 = arith.cmpf oge, %15, %19 : vector<8x8xf32>
    %c8_i32 = arith.constant 8 : i32
    %21 = vector.broadcast %c8_i32 : i32 to vector<8x8xi32>
    %22 = arith.select %20, %16, %21 : vector<8x8xi1>, vector<8x8xi32>
    %cst_11 = arith.constant dense<2147483647> : vector<8xi32>
    %23 = vector.multi_reduction <minsi>, %22, %cst_11 [1] : vector<8x8xi32> to vector<8xi32>
    %24 = vector.shape_cast %23 : vector<8xi32> to vector<8x1xi32>
    %25 = vector.broadcast %24 : vector<8x1xi32> to vector<8x8xi32>
    %26 = arith.cmpi eq, %16, %25 : vector<8x8xi32>
    %27 = arith.extui %26 : vector<8x8xi1> to vector<8x8xi32>
    %28 = arith.sitofp %27 : vector<8x8xi32> to vector<8x8xf32>
    %cst_12 = arith.constant 1.000000e+00 : f32
    %29 = vector.broadcast %cst_12 : f32 to vector<8x1xf32>
    %cst_13 = arith.constant dense<0.000000e+00> : vector<8x1xf32>
    %30 = tpu.matmul %28, %29, %cst_13 {dimension_numbers = #tpu.dot_dimension_numbers<[0], [0], [1], [1], [0, 1, 1, 1], [], []>} : vector<8x8xf32>, vector<8x1xf32>, vector<8x1xf32> -> vector<8x1xf32>
    %cst_14 = arith.constant 9.99999974E-5 : f32
    %31 = vector.broadcast %cst_14 : f32 to vector<8x1xf32>
    %32 = arith.addf %30, %31 : vector<8x1xf32>
    %cst_15 = arith.constant 1.000000e+00 : f32
    %33 = vector.broadcast %cst_15 : f32 to vector<8x1xf32>
    %34 = arith.divf %33, %32 : vector<8x1xf32>
    %cst_16 = arith.constant 0.000000e+00 : f32
    %35 = vector.broadcast %cst_16 : f32 to vector<8x1xf32>
    %36 = arith.cmpf ogt, %30, %35 : vector<8x1xf32>
    %37 = arith.extui %36 : vector<8x1xi1> to vector<8x1xi32>
    %38 = arith.sitofp %37 : vector<8x1xi32> to vector<8x1xf32>
    %39 = arith.mulf %34, %38 : vector<8x1xf32>
    %40 = tpu.iota {dimensions = array<i32: 0>} : vector<8x1xi32>
    %41 = arith.cmpi eq, %24, %40 : vector<8x1xi32>
    %42 = arith.extui %41 : vector<8x1xi1> to vector<8x1xi32>
    %43 = arith.sitofp %42 : vector<8x1xi32> to vector<8x1xf32>
    %cst_17 = arith.constant 0.999899983 : f32
    %44 = vector.broadcast %cst_17 : f32 to vector<8x1xf32>
    %45 = arith.mulf %44, %43 : vector<8x1xf32>
    %46 = arith.mulf %45, %39 : vector<8x1xf32>
    %47 = arith.truncf %1 : vector<8x32xf32> to vector<8x32xbf16>
    %c0_18 = arith.constant 0 : index
    %c0_19 = arith.constant 0 : index
    %c0_20 = arith.constant 0 : index
    %48 = vector.load %arg2[%c0_18, %c0_19, %c0_20] : memref<4x32x32xbf16, #tpu.memory_space<vmem>>, vector<1x32x32xbf16>
    %49 = vector.shape_cast %48 : vector<1x32x32xbf16> to vector<32x32xbf16>
    %c1_21 = arith.constant 1 : index
    %c0_22 = arith.constant 0 : index
    %c0_23 = arith.constant 0 : index
    %50 = vector.load %arg2[%c1_21, %c0_22, %c0_23] : memref<4x32x32xbf16, #tpu.memory_space<vmem>>, vector<1x32x32xbf16>
    %51 = vector.shape_cast %50 : vector<1x32x32xbf16> to vector<32x32xbf16>
    %c2_24 = arith.constant 2 : index
    %c0_25 = arith.constant 0 : index
    %c0_26 = arith.constant 0 : index
    %52 = vector.load %arg2[%c2_24, %c0_25, %c0_26] : memref<4x32x32xbf16, #tpu.memory_space<vmem>>, vector<1x32x32xbf16>
    %53 = vector.shape_cast %52 : vector<1x32x32xbf16> to vector<32x32xbf16>
    %c3_27 = arith.constant 3 : index
    %c0_28 = arith.constant 0 : index
    %c0_29 = arith.constant 0 : index
    %54 = vector.load %arg2[%c3_27, %c0_28, %c0_29] : memref<4x32x32xbf16, #tpu.memory_space<vmem>>, vector<1x32x32xbf16>
    %55 = vector.shape_cast %54 : vector<1x32x32xbf16> to vector<32x32xbf16>
    %cst_30 = arith.constant dense<0.000000e+00> : vector<8x32xf32>
    %56 = tpu.matmul %47, %49, %cst_30 {dimension_numbers = #tpu.dot_dimension_numbers<[1], [0], [0], [1], [0, 0, 1, 1], [], []>} : vector<8x32xbf16>, vector<32x32xbf16>, vector<8x32xf32> -> vector<8x32xf32>
    %57 = vector.broadcast %2 : vector<1x32xf32> to vector<8x32xf32>
    %58 = arith.addf %56, %57 : vector<8x32xf32>
    %59 = vector.broadcast %46 : vector<8x1xf32> to vector<8x32xf32>
    %60 = arith.mulf %59, %58 : vector<8x32xf32>
    %cst_31 = arith.constant 0.000000e+00 : f32
    %61 = vector.broadcast %cst_31 : f32 to vector<8x32xf32>
    %62 = arith.maximumf %60, %61 : vector<8x32xf32>
    %c0_32 = arith.constant 0 : index
    %c0_33 = arith.constant 0 : index
    %c0_34 = arith.constant 0 : index
    %63 = vector.load %arg4[%c0_32, %c0_33, %c0_34] : memref<1x8x32xf32, #tpu.memory_space<vmem>>, vector<1x8x32xf32>
    %64 = vector.shape_cast %63 : vector<1x8x32xf32> to vector<8x32xf32>
    %65 = arith.mulf %62, %64 : vector<8x32xf32>
    %66 = arith.truncf %65 : vector<8x32xf32> to vector<8x32xbf16>
    %cst_35 = arith.constant dense<0.000000e+00> : vector<8x32xf32>
    %67 = tpu.matmul %66, %53, %cst_35 {dimension_numbers = #tpu.dot_dimension_numbers<[1], [0], [0], [1], [0, 0, 1, 1], [], []>} : vector<8x32xbf16>, vector<32x32xbf16>, vector<8x32xf32> -> vector<8x32xf32>
    %68 = vector.broadcast %3 : vector<1x32xf32> to vector<8x32xf32>
    %69 = arith.addf %67, %68 : vector<8x32xf32>
    %70 = vector.broadcast %46 : vector<8x1xf32> to vector<8x32xf32>
    %71 = arith.mulf %70, %69 : vector<8x32xf32>
    %cst_36 = arith.constant dense<0.000000e+00> : vector<8x32xf32>
    %72 = tpu.matmul %47, %51, %cst_36 {dimension_numbers = #tpu.dot_dimension_numbers<[1], [0], [0], [1], [0, 0, 1, 1], [], []>} : vector<8x32xbf16>, vector<32x32xbf16>, vector<8x32xf32> -> vector<8x32xf32>
    %73 = arith.truncf %71 : vector<8x32xf32> to vector<8x32xbf16>
    %cst_37 = arith.constant dense<0.000000e+00> : vector<8x32xf32>
    %74 = tpu.matmul %73, %55, %cst_37 {dimension_numbers = #tpu.dot_dimension_numbers<[1], [0], [0], [1], [0, 0, 1, 1], [], []>} : vector<8x32xbf16>, vector<32x32xbf16>, vector<8x32xf32> -> vector<8x32xf32>
    %75 = arith.addf %72, %74 : vector<8x32xf32>
    %76 = vector.broadcast %4 : vector<1x32xf32> to vector<8x32xf32>
    %77 = arith.addf %75, %76 : vector<8x32xf32>
    %cst_38 = arith.constant dense<0.000000e+00> : vector<8xf32>
    %78 = vector.multi_reduction <add>, %77, %cst_38 [1] : vector<8x32xf32> to vector<8xf32>
    %79 = vector.shape_cast %78 : vector<8xf32> to vector<8x1xf32>
    %cst_39 = arith.constant 3.200000e+01 : f32
    %80 = vector.broadcast %cst_39 : f32 to vector<8x1xf32>
    %81 = arith.divf %79, %80 : vector<8x1xf32>
    %82 = vector.broadcast %81 : vector<8x1xf32> to vector<8x32xf32>
    %83 = arith.subf %77, %82 : vector<8x32xf32>
    %84 = vector.broadcast %81 : vector<8x1xf32> to vector<8x32xf32>
    %85 = arith.subf %77, %84 : vector<8x32xf32>
    %86 = arith.mulf %83, %85 : vector<8x32xf32>
    %cst_40 = arith.constant dense<0.000000e+00> : vector<8xf32>
    %87 = vector.multi_reduction <add>, %86, %cst_40 [1] : vector<8x32xf32> to vector<8xf32>
    %88 = vector.shape_cast %87 : vector<8xf32> to vector<8x1xf32>
    %cst_41 = arith.constant 3.200000e+01 : f32
    %89 = vector.broadcast %cst_41 : f32 to vector<8x1xf32>
    %90 = arith.divf %88, %89 : vector<8x1xf32>
    %91 = vector.broadcast %81 : vector<8x1xf32> to vector<8x32xf32>
    %92 = arith.subf %77, %91 : vector<8x32xf32>
    %cst_42 = arith.constant 9.99999974E-6 : f32
    %93 = vector.broadcast %cst_42 : f32 to vector<8x1xf32>
    %94 = arith.addf %90, %93 : vector<8x1xf32>
    %95 = math.rsqrt %94 : vector<8x1xf32>
    %96 = vector.broadcast %95 : vector<8x1xf32> to vector<8x32xf32>
    %97 = arith.mulf %92, %96 : vector<8x32xf32>
    %98 = vector.broadcast %5 : vector<1x32xf32> to vector<8x32xf32>
    %99 = arith.mulf %97, %98 : vector<8x32xf32>
    %100 = vector.broadcast %6 : vector<1x32xf32> to vector<8x32xf32>
    %101 = arith.addf %99, %100 : vector<8x32xf32>
    %102 = vector.shape_cast %101 : vector<8x32xf32> to vector<1x8x32xf32>
    %c0_43 = arith.constant 0 : index
    %c0_44 = arith.constant 0 : index
    %c0_45 = arith.constant 0 : index
    %103 = vector.load %arg5[%c0_43, %c0_44, %c0_45] : memref<1x8x32xf32, #tpu.memory_space<vmem>>, vector<1x8x32xf32>
    tpu.vector_store %arg5[%c0_43, %c0_44, %c0_45], %102 {strides = array<i32>} : memref<1x8x32xf32, #tpu.memory_space<vmem>>, vector<1x8x32xf32>,
    return
  }
  func.func @transform_0(%arg0: i32) -> (i32, i32, i32) {
    %c0_i32 = arith.constant 0 : i32
    %c0_i32_0 = arith.constant 0 : i32
    %c0_i32_1 = arith.constant 0 : i32
    return %arg0, %c0_i32, %c0_i32_0 : i32, i32, i32
  }
  func.func @transform_1(%arg0: i32) -> (i32, i32, i32) {
    %c0_i32 = arith.constant 0 : i32
    %c0_i32_0 = arith.constant 0 : i32
    %c0_i32_1 = arith.constant 0 : i32
    %c0_i32_2 = arith.constant 0 : i32
    return %c0_i32, %c0_i32_0, %c0_i32_1 : i32, i32, i32
  }
  func.func @transform_2(%arg0: i32) -> (i32, i32) {
    %c0_i32 = arith.constant 0 : i32
    %c0_i32_0 = arith.constant 0 : i32
    %c0_i32_1 = arith.constant 0 : i32
    return %c0_i32, %c0_i32_0 : i32, i32
  }
  func.func @transform_3(%arg0: i32) -> (i32, i32, i32) {
    %c0_i32 = arith.constant 0 : i32
    %c0_i32_0 = arith.constant 0 : i32
    %c0_i32_1 = arith.constant 0 : i32
    return %arg0, %c0_i32, %c0_i32_0 : i32, i32, i32
  }
  func.func @transform_4(%arg0: i32) -> (i32, i32, i32) {
    %c0_i32 = arith.constant 0 : i32
    %c0_i32_0 = arith.constant 0 : i32
    %c0_i32_1 = arith.constant 0 : i32
    return %arg0, %c0_i32, %c0_i32_0 : i32, i32, i32
  }
}

</mosaic_0001>

<bundles_post_ra>
// kernel: tpu_custom_call.1
= control target key start
LH: loop header
LB: loop body
LE: loop exit
PB: predicated region body
PF: predicated region fallthrough
CT: control target
= control target key end

     0   :  { %s1673_s0 = inlined_call_operand.hbm [shape: f32[2,8,32], index: 0, kind: input, shape index: {}]   ;;  %s1674_s1 = inlined_call_operand.hbm [shape: bf16[4,32,32], index: 1, kind: input, shape index: {}]   ;;  %s1675_s2 = inlined_call_operand.hbm [shape: f32[8,32], index: 2, kind: input, shape index: {}]   ;;  %s1676_s3 = inlined_call_operand.hbm [shape: f32[2,8,32], index: 3, kind: input, shape index: {}]   ;;  %s1677_s4 = inlined_call_operand.hbm [shape: f32[2,8,32], index: 4, kind: output, shape index: {}]  }
   0x1   :  { %1683 = sst [smem:[#allocation15_spill]] %s1673_s0 }
   0x2   :  { %9 = vsyncpa [#allocation3], 0 }
   0x3   :  { %11 = vsyncpa [#allocation3 + $0x1], 0 }
   0x4   :  { %12 = vsyncpa [#allocation6], 0 }
   0x5   :  { %13 = vsyncpa [#allocation9], 0 }
   0x6   :  { %15 = vsyncpa [#allocation9 + $0x1], 0 }
   0x7   :  { %16 = vsyncpa [#allocation4], 0 }
   0x8   :  { %18 = vsyncpa [#allocation4 + $0x1], 0  ;;  %s1354_s15 = smov 0   ;;  %s1356_s16 = smov 0  }
   0x9   :  { %s1358_s17 = smov 0   ;;  %s1360_s18 = smov 0  }
   0xa LB: > { %s1375_s19 = sadd.s32 4294967295, %s1316_s18   ;;  %s930_s20 = sadd.s32 4294967294, %s1316_s18   ;;  %s1316_s18 = sphi %s1360_s18, %s1703_s18   ;;  %s1312_s17 = sphi %s1358_s17, %s1702_s17   ;;  %s1308_s16 = sphi %s1356_s16, %s1701_s16   ;;  %s1304_s15 = sphi %s1354_s15, %s1700_s15  }
   0xb   : > { %p44_p0 = scmp.ne.s32.totalorder %s1308_s16, %s1304_s15  ;;  %p1678_p1 = scmp.eq.s32.totalorder %s1375_s19, 0 }
   0xc   : > { %p142_p3 = scmp.eq.s32.totalorder %s930_s20, 1  ;;  %p931_p5 = scmp.ge.s32.totalorder %s1316_s18, 1 }
   0xd   : > { %p1384_p4 = por %p1678_p1, %p44_p0  ;;  %p149_p7 = scmp.lt.s32.totalorder %s1316_s18, 3 }
   0xe   : > { %p1389_p6 = por %p142_p3, %p44_p0  ;;  %s1318_s24 = smov [#allocation5]  }
   0xf   : > { %s1684_s21 = scalar_select %p1384_p4, 1, 0 }
  0x10   : > { %s1685_s22 = scalar_select %p1389_p6, 1, 0 }
  0x11   : > { %p1394_p8 = pnand %p931_p5, %p149_p7  ;;  %s161_s25 = sshll.u32 %s1318_s24, 4  ;;  %s1398_s25 = int_to_ptr.vmem [resolvable:$true] %s161_s25 }
  0x12   : > { %s1319_s27 = smov [#allocation7]   ;;  %s1126_s5 = scalar_lea.hbm %s1674_s1, 1024 }
  0x13   : > { %s1686_s23 = scalar_select %p1394_p8, 1, 0 }
  0x14   : > { %p1044_p9 = pneg %p1394_p8  ;;  %s175_s28 = sshll.u32 %s1319_s27, 4  ;;  %s1409_s28 = int_to_ptr.vmem [resolvable:$true] %s175_s28 }
  0x15   : > { %p1127_p12 = scmp.ne.s32.totalorder %s1674_s1, %s1126_s5  ;;  %p1133_p5 = scmp.lt.u32.totalorder %s1126_s5, %s1674_s1 }
  0x16   : > { %p1405_p11 = pnand %p1044_p9, %p1678_p1 }
  0x18   : > { %p1128_p13 = pneg %p1405_p11 }
  0x1a   : > { %p1129_p0 = pnand %p1128_p13, %p1127_p12 }
  0x1c   : > { %p1130_p3 = pneg %p1129_p0 }
  0x1e   : > { %p1135_p7 = pnand %p1133_p5, %p1130_p3 }
  0x20   : > { %1138 = shalt.err (!%p1135_p7)
}
  0x21   : > { %s1139_s10 = scalar_lea.vmem %s1398_s25, 1024  ;;  %p1147_p2 = scmp.lt.s32.totalorder %s1398_s25, %s1398_s25 }
  0x22   : > { %p1140_p9 = scmp.ne.s32.totalorder %s1398_s25, %s1139_s10  ;;  %p1148_p12 = scmp.lt.s32.totalorder %s1139_s10, %s1139_s10 }
  0x24   : > { %p1142_p10 = pnand %p1140_p9, %p1128_p13  ;;  %p1149_p0 = por %p1148_p12, %p1147_p2 }
  0x26   : > { %p1143_p1 = pneg %p1142_p10 }
  0x28   : > { %p1150_p6 = pnand %p1149_p0, %p1143_p1 }
  0x2a   : > { %1153 = shalt.err (!%p1150_p6)
}
  0x2b   : > { %s1320_s11 = smov 64   ;;  %s1321_s12 = smov 4  }
  0x2c   : > { %1047 = dma.hbm_to_vmem [thread:$0]  (!%p1405_p11), %s1674_s1, 1024, %s1398_s25, [#allocation6], %s1320_s11, %s1320_s11, %s1321_s12  }
  0x2d   : > { %s1154_s27 = scalar_lea.hbm %s1675_s2, 128 }
  0x2e   : > { %p1155_p2 = scmp.ne.s32.totalorder %s1675_s2, %s1154_s27  ;;  %p1161_p10 = scmp.lt.u32.totalorder %s1154_s27, %s1675_s2 }
  0x30   : > { %p1157_p1 = pnand %p1155_p2, %p1128_p13 }
  0x32   : > { %p1158_p6 = pneg %p1157_p1 }
  0x34   : > { %p1163_p3 = pnand %p1161_p10, %p1158_p6 }
  0x36   : > { %1166 = shalt.err (!%p1163_p3)
}
  0x37   : > { %s1167_s25 = scalar_lea.vmem %s1409_s28, 128  ;;  %p1175_p12 = scmp.lt.s32.totalorder %s1409_s28, %s1409_s28 }
  0x38   : > { %p1168_p5 = scmp.ne.s32.totalorder %s1409_s28, %s1167_s25  ;;  %p1176_p0 = scmp.lt.s32.totalorder %s1167_s25, %s1167_s25 }
  0x3a   : > { %p1170_p7 = pnand %p1168_p5, %p1128_p13  ;;  %p1177_p2 = por %p1176_p0, %p1175_p12 }
  0x3c   : > { %p1171_p9 = pneg %p1170_p7 }
  0x3e   : > { %p1178_p1 = pnand %p1177_p2, %p1171_p9 }
  0x40   : > { %1181 = shalt.err (!%p1178_p1)
}
  0x41   : > { %1050 = dma.hbm_to_vmem [thread:$0]  (!%p1405_p11), %s1675_s2, 128, %s1409_s28, [#allocation6]  }
  0x42   : > { %s1464_s9 = sadd.s32 1, %s1316_s18   ;;  %s31_s26 = sadd.s32 1, %s1312_s17 }
  0x43   : > { %s28_s10 = ssub.s32 %s1316_s18, %s1464_s9  ;;  %p38_p13 = scmp.ne.s32.totalorder %s1312_s17, %s1308_s16 }
  0x44   : > { %p29_p6 = scmp.eq.s32.totalorder %s28_s10, 0  ;;  %p39_p10 = scmp.eq.s32.totalorder %s1316_s18, 0 }
  0x45   : > { %p1688_p3 = scmp.eq.s32.totalorder %s1375_s19, 1  ;;  %p1064_p7 = scmp.lt.s32.totalorder %s1316_s18, 2 }
  0x46   : > { %s1480_s12 = scalar_select %p29_p6, %s1312_s17, %s31_s26  }
  0x47   : > { %p1474_p5 = por %p1688_p3, %p38_p13  ;;  %p40_p9 = por %p39_p10, %p38_p13 }
  0x48   : > { %s1483_s13 = sand.u32 1, %s1312_s17   ;;  %s936_s14 = sshll.u32 %s1316_s18, 7 }
  0x49   : > { %s1689_s11 = scalar_select %p1474_p5, 1, 0 }
  0x4a   : > { %s1679_s28 = sshll.u32 %s1483_s13, 3  ;;  %s1690_s0 = sld [smem:[#allocation15_spill]] }
  0x4b   : > { %s190_s29 = scalar_lea.vmem [#allocation2], %s1679_s28  ;;  %p1496_p11 = pnand %p1064_p7, %p40_p9 }
  0x4c   : > { %s197_s30 = sshll.u32 %s190_s29, 4  ;;  %s1503_s7 = scalar_lea.hbm %s1676_s3, %s936_s14  ;;  %s1494_s30 = int_to_ptr.vmem [resolvable:$true] %s197_s30 }
  0x4d   : > { %s187_s8 = scalar_lea.sflag [#allocation3], %s1483_s13  ;;  %p1184_p0 = pneg %p1496_p11 }
  0x50   : > { %s1490_s27 = scalar_lea.hbm %s1690_s0, %s936_s14  ;;  %s1187_s24 = scalar_lea.hbm %s1690_s0, 256 }
  0x51   : > { %s1182_s26 = scalar_lea.hbm %s1490_s27, 128  ;;  %p1188_p13 = scmp.lt.u32.totalorder %s1490_s27, %s1690_s0 }
  0x52   : > { %p1183_p12 = scmp.ne.s32.totalorder %s1490_s27, %s1182_s26  ;;  %p1189_p6 = scmp.lt.u32.totalorder %s1187_s24, %s1182_s26 }
  0x53   : > { %p1191_p3 = scmp.lt.u32.totalorder %s1182_s26, %s1490_s27 }
  0x54   : > { %p1185_p2 = pnand %p1184_p0, %p1183_p12  ;;  %p1190_p10 = por %p1189_p6, %p1188_p13 }
  0x56   : > { %p1186_p1 = pneg %p1185_p2  ;;  %p1192_p7 = por %p1191_p3, %p1190_p10 }
  0x58   : > { %p1193_p9 = pnand %p1192_p7, %p1186_p1 }
  0x5a   : > { %1196 = shalt.err (!%p1193_p9)
}
  0x5b   : > { %s1197_s14 = scalar_lea.vmem %s1494_s30, 128  ;;  %s1322_s6 = smov [#allocation2]  }
  0x5c   : > { %p1198_p12 = scmp.ne.s32.totalorder %s1494_s30, %s1197_s14  ;;  %s1202_s25 = sshll.u32 %s1322_s6, 4  ;;  %s1203_s25 = int_to_ptr.vmem [resolvable:$false] %s1202_s25 }
  0x5d   : > { %s1204_s28 = scalar_lea.vmem %s1203_s25, 256  ;;  %p1205_p4 = scmp.lt.s32.totalorder %s1494_s30, %s1203_s25 }
  0x5e   : > { %p1200_p2 = pnand %p1198_p12, %p1184_p0  ;;  %p1206_p13 = scmp.lt.s32.totalorder %s1204_s28, %s1197_s14 }
  0x60   : > { %p1201_p5 = pneg %p1200_p2  ;;  %p1207_p6 = por %p1206_p13, %p1205_p4 }
  0x62   : > { %p1208_p10 = pnand %p1207_p6, %p1201_p5 }
  0x64   : > { %1211 = shalt.err (!%p1208_p10)
}
  0x65   : > { %1054 = dma.hbm_to_vmem [thread:$0]  (!%p1496_p11), %s1490_s27, 128, %s1494_s30, %s187_s8  }
  0x66   : > { %s1692_s26 = sshll.u32 %s1483_s13, 3  ;;  %s205_s24 = scalar_lea.sflag [#allocation9], %s1483_s13 }
  0x67   : > { %s208_s10 = scalar_lea.vmem [#allocation8], %s1692_s26  ;;  %s1212_s29 = scalar_lea.hbm %s1503_s7, 128 }
  0x68   : > { %s215_s20 = sshll.u32 %s208_s10, 4  ;;  %p1213_p4 = scmp.ne.s32.totalorder %s1503_s7, %s1212_s29  ;;  %s216_s20 = int_to_ptr.vmem [resolvable:$true] %s215_s20 }
  0x69   : > { %s1217_s25 = scalar_lea.hbm %s1676_s3, 256  ;;  %p1218_p3 = scmp.lt.u32.totalorder %s1503_s7, %s1676_s3 }
  0x6a   : > { %p1215_p5 = pnand %p1213_p4, %p1184_p0  ;;  %p1219_p7 = scmp.lt.u32.totalorder %s1217_s25, %s1212_s29 }
  0x6b   : > { %p1221_p12 = scmp.lt.u32.totalorder %s1212_s29, %s1503_s7 }
  0x6c   : > { %p1216_p1 = pneg %p1215_p5  ;;  %p1220_p9 = por %p1219_p7, %p1218_p3 }
  0x6e   : > { %p1222_p2 = por %p1221_p12, %p1220_p9 }
  0x70   : > { %p1223_p13 = pnand %p1222_p2, %p1216_p1 }
  0x72   : > { %1226 = shalt.err (!%p1223_p13)
}
  0x73   : > { %s1227_s13 = scalar_lea.vmem %s216_s20, 128  ;;  %s1323_s27 = smov [#allocation8]  }
  0x74   : > { %p1228_p6 = scmp.ne.s32.totalorder %s216_s20, %s1227_s13  ;;  %s1232_s30 = sshll.u32 %s1323_s27, 4  ;;  %s1233_s30 = int_to_ptr.vmem [resolvable:$false] %s1232_s30 }
  0x75   : > { %s1234_s8 = scalar_lea.vmem %s1233_s30, 256  ;;  %p1235_p5 = scmp.lt.s32.totalorder %s216_s20, %s1233_s30 }
  0x76   : > { %p1230_p10 = pnand %p1228_p6, %p1184_p0  ;;  %p1236_p8 = scmp.lt.s32.totalorder %s1234_s8, %s1227_s13 }
  0x78   : > { %p1231_p4 = pneg %p1230_p10  ;;  %p1237_p3 = por %p1236_p8, %p1235_p5 }
  0x7a   : > { %p1238_p7 = pnand %p1237_p3, %p1231_p4 }
  0x7c   : > { %1241 = shalt.err (!%p1238_p7)
}
  0x7d   : > { %1057 = dma.hbm_to_vmem [thread:$0]  (!%p1496_p11), %s1503_s7, 128, %s216_s20, %s205_s24  }
  0x7e   : > { %p1693_p1 = scmp.ne.s32.totalorder %s1686_s23, 0 }
  0x7f   : > { %s1556_s0 = sand.u32 (!%p1693_p1), 1, %s1308_s16   ;;  %p1694_p8 = scmp.ne.s32.totalorder (!%p1693_p1), %s1684_s21, 0 }
  0x80   : > { %224 = sbr.rel (%p1693_p1) target bundleno = 2230 (0x8b6), region = 36  ;;  %s1559_s26 = sshll.u32 (!%p1693_p1), %s1556_s0, 3 }
  0x81   : > { %s227_s10 = scalar_lea.sflag (!%p1693_p1), [#allocation3], %s1556_s0  ;;  %s230_s29 = scalar_lea.vmem (!%p1693_p1), [#allocation2], %s1559_s26 }
  0x87   : > { %1287 = dma.done.wait (%p1694_p8), %s227_s10, 128  }
  0x88   : > { %1289 = vsyncadd (%p1694_p8), %s227_s10, 4294967168  ;;  %p1695_p11 = scmp.eq.s32.totalorder %s1375_s19, 0 }
  0x8a   : > { %1291 = dma.done.wait (%p1695_p11), [#allocation6], 1152   ;;  %p1696_p0 = pmov %p1695_p11 }
  0x8b   : > { %s244_s23 = scalar_lea.sflag [#allocation9], %s1556_s0  ;;  %s247_s5 = scalar_lea.vmem [#allocation8], %s1559_s26 }
  0x8c   : > { %1293 = vsyncadd (%p1696_p0), [#allocation6], 4294966144 }
  0x8d   : > { %1295 = dma.done.wait (%p1694_p8), %s244_s23, 128  }
  0x8e   : > { %1297 = vsyncadd (%p1694_p8), %s244_s23, 4294967168  ;;  %v1577_v0 = vld [vmem:[%s230_s29] sm:$0xff]  ;;  %vm285_vm0 = vcmask 261120   ;;  %v1324_v3 = vmov 0.0   ;;  %vm1325_vm1 = vmmov 0   ;;  %vm374_vm4 = vcmask 64512  }
  0x8f   : > { %v284_v1 = vmul.f32 %v1577_v0, %v1577_v0  ;;  %988 = vmatprep.subr.mxu0 %v1324_v3  ;;  %993 = vmatprep.subr.mxu1 %v1324_v3  ;;  %v372_v16 = vlaneseq  ;;  %v1326_v27 = vmov 1.0   ;;  %v1110_v34 = vld [vmem:[#allocation5] sm:$0xff]   ;;  %v1111_v36 = vld [vmem:[#allocation5 + $0x8] sm:$0xff]   ;;  %v517_v37 = vpack.c.bf16 %v1577_v0, %v1577_v0  ;;  %v1115_v55 = vld [vmem:[#allocation5 + $0x30] sm:$0xff]   ;;  %s969_s21 = sshll.u32 %s1375_s19, 7  ;;  %s276_s7 = scalar_lea.vmem [#allocation10], %s1559_s26 }
  0x90   : > { %990 = vmatprep.mubr.msk.f32.mxu0 %vm1325_vm1, %v1324_v3  ;;  %995 = vmatprep.mubr.msk.f32.mxu1 %vm1325_vm1, %v1324_v3  ;;  %v1327_v38 = vmov 0   ;;  %v1112_v53 = vld [vmem:[#allocation5 + $0x20] sm:$0xff]   ;;  %v1113_v54 = vld [vmem:[#allocation5 + $0x28] sm:$0xff]   ;;  %v1114_v63 = vld [vmem:[#allocation5 + $0x10] sm:$0xff]   ;;  %s818_s20 = sshll.u32 %s276_s7, 4  ;;  %s1628_s6 = scalar_lea.hbm %s1677_s4, %s969_s21  ;;  %s1630_s20 = int_to_ptr.vmem [resolvable:$true] %s818_s20 }
  0x91   : > { %v286_v2 = vsel %vm285_vm0, %v284_v1, 0.0  ;;  %v373_v17 = vand.u32 127, %v372_v16  ;;  %994 = vmatpush3.msra.mxu1 %v1326_v27  ;;  %1108 = vset.pattern.permute.xlu1 %v1327_v38  ;;  %v511_v42 = vshrl.u32 %v372_v16, 7  ;;  %v951_v56 = vld [vmem:[#allocation7] ss:$0 sm:$0xff]  ;;  %v603_v60 = vld [vmem:[%s247_s5] sm:$0xff] }
  0x92   : > { %287 = vadd.xlane.f32.xlu0 %v286_v2  ;;  %998 = vmatprep.subr.bf16.mxu1 %v1324_v3  ;;  %v1116_v1 = vld [vmem:[#allocation5 + $0x18] sm:$0xff]   ;;  %v965_v16 = vld [vmem:[#allocation7 + $0x2] ss:$0 sm:$0xff]  ;;  %s805_s25 = scalar_lea.sflag [#allocation4], %s1556_s0  ;;  %s1242_s28 = scalar_lea.vmem %s1630_s20, 128 }
  0x93   : > { %v1117_v2 = vld [vmem:[#allocation5 + $0x38] sm:$0xff]   ;;  %p1243_p9 = scmp.ne.s32.totalorder %s1630_s20, %s1242_s28  ;;  %p1697_p12 = scmp.ne.s32.totalorder %s1689_s11, 0 }
  0x94   : > { %s1328_s19 = smov [#allocation10]  }
  0x95   : > { %p1244_p2 = pnand %p1243_p9, %p1697_p12  ;;  %s1246_s13 = sshll.u32 %s1328_s19, 4  ;;  %s1247_s13 = int_to_ptr.vmem [resolvable:$false] %s1246_s13 }
  0x96   : > { %s1248_s27 = scalar_lea.vmem %s1247_s13, 256  ;;  %p1249_p6 = scmp.lt.s32.totalorder %s1630_s20, %s1247_s13 }
  0x97   : > { %p1245_p13 = pneg %p1244_p2  ;;  %p1250_p10 = scmp.lt.s32.totalorder %s1248_s27, %s1242_s28 }
  0x99   : > { %p1251_p4 = por %p1250_p10, %p1249_p6 }
  0x9b   : > { %p1252_p5 = pnand %p1251_p4, %p1245_p13 }
 0x11f   : > { %v288_v4 = vpop.xlane.xlu0 %287 }
 0x120   : > { %1118 = vrsqrt.f32 %v288_v4  ;;  %vm291_vm2 = vcmp.eq.f32.partialorder %v288_v4, inf  ;;  %v294_v7 = vand.u32 2147483648, %v288_v4  ;;  %vm293_vm3 = vcmp.eq.f32.partialorder %v288_v4, 0.0 }
 0x12a   : > { %v1119_v5 = vpop.eup %1118 }
 0x12b   : > { %v290_v6 = vmul.f32 %v1119_v5, %v288_v4 }
 0x12d   : > { %v292_v8 = vsel %vm291_vm2, %v288_v4, %v290_v6  ;;  %v955_v4 = vld [vmem:[#allocation7 + $0x1] ss:$0 sm:$0xff] }
 0x12e   : > { %v295_v9 = vsel %vm293_vm3, %v294_v7, %v292_v8 }
 0x12f   : > { %v296_v10 = vmax.f32 %v295_v9, 1e-12 }
 0x131   : > { %1120 = vrcp.f32 %v296_v10 }
 0x13b   : > { %v1121_v11 = vpop.eup %1120 }
 0x13c   : > { %v298_v12 = vmul.f32 %v1121_v11, %v1577_v0 }
 0x13e   : > { %989 = vmatpush3.xpose.msk.msra.mxu0 %vm285_vm0, %v298_v12 }
 0x13f   : > { %1006 = vmatprep.subr.bf16.mxu0 %v1324_v3 }
 0x141   : > { %991 = vmatmul.mubr.msk.f32.vlgmr.msra.gmra.mrb[0].mxu0 %vm285_vm0, %v298_v12 }
 0x142   : > { %1010 = vmatprep.mubr.msk.bf16.mxu0 %vm1325_vm1, %v1324_v3  ;;  %1007 = vmatpush3.bf16.msra.mxu0 %v1112_v53 }
 0x143   : > { %1008 = vmatprep.subr.bf16.mxu0 %v1324_v3 }
 0x146   : > { %1009 = vmatpush3.bf16.msra.mxu0 %v1113_v54 }
 0x147   : > { %1022 = vmatprep.subr.bf16.mxu0 %v1324_v3 }
 0x214   : > { %v368_v13 = vpop.f32.mrb[0].mxu0 }
 0x215   : > { %v992_v14 = vpop.f32.mrb[1].mxu0  ;;  %v375_v15 = vsel %vm374_vm4, %v368_v13, -inf }
 0x216   : > { %376 = vmax.xlane.f32.xlu0 %v375_v15 }
 0x2a3   : > { %v377_v18 = vpop.xlane.xlu0 %376 }
 0x2a4   : > { %vm378_vm5 = vcmp.ge.f32.partialorder %v368_v13, %v377_v18 }
 0x2a5   : > { %v379_v19 = vsel %vm378_vm5, %v373_v17, 8 }
 0x2a6   : > { %v380_v20 = vsel %vm374_vm4, %v379_v19, 2147483647 }
 0x2a7   : > { %v382_v21 = vshra.s32 %v380_v20, 16  ;;  %v381_v23 = vand.u32 65535, %v380_v20 }
 0x2a9   : > { %v384_v22 = vcvt.s32.f32 %v382_v21  ;;  %v383_v25 = vcvt.s32.f32 %v381_v23 }
 0x2ab   : > { %385 = vmin.xlane.f32.xlu1 %v384_v22 }
 0x338   : > { %v386_v24 = vpop.xlane.xlu1 %385 }
 0x339   : > { %vm387_vm6 = vcmp.eq.f32.partialorder %v384_v22, %v386_v24  ;;  %v392_v28 = vcvt.f32.s32 %v386_v24 }
 0x33a   : > { %v388_v26 = vsel %vm387_vm6, %v383_v25, inf }
 0x33b   : > { %389 = vmin.xlane.f32.xlu1 %v388_v26  ;;  %v393_v30 = vshll.u32 %v392_v28, 16 }
 0x3c8   : > { %v390_v29 = vpop.xlane.xlu1 %389 }
 0x3c9   : > { %v391_v31 = vcvt.f32.s32 %v390_v29 }
 0x3cb   : > { %v394_v32 = vadd.s32 %v393_v30, %v391_v31 }
 0x3cd   : > { %vm395_vm7 = vcmp.eq.s32.totalorder %v373_v17, %v394_v32  ;;  %vm512_vm8 = vcmp.eq.s32.totalorder %v394_v32, %v511_v42  ;;  %v966_v32 = vld [vmem:[#allocation7 + $0x3] ss:$0 sm:$0xff] }
 0x3ce   : > { %v947_v33 = vsel %vm395_vm7, 1.0, %v1324_v3  ;;  %v950_v46 = vsel %vm512_vm8, 1.0, %v1324_v3 }
 0x3cf   : > { %398 = vxpose.xlu0.b32.start.end [1/1] (short) (narrow) %v947_v33, 8  ;;  %v515_v50 = vmul.f32 0.9999, %v950_v46 }
 0x3f8   : > { %1109 = vset.pattern.permute.xlu0 %v1327_v38 }
 0x44f   : > { %v414_v35 = vpop.trf.xlu0 }
 0x450   : > { %996 = vmatmul.mubr.msk.f32.vlgmr.msra.gmra.mrb[0].mxu1 %vm374_vm4, %v414_v35 }
 0x451   : > { %999 = vmatpush3.bf16.msra.mxu1 %v1110_v34  ;;  %1002 = vmatprep.mubr.msk.bf16.mxu1 %vm1325_vm1, %v1324_v3  ;;  %v967_v34 = vld [vmem:[#allocation7 + $0x4] ss:$0 sm:$0xff] }
 0x452   : > { %1000 = vmatprep.subr.bf16.mxu1 %v1324_v3 }
 0x455   : > { %1001 = vmatpush3.bf16.msra.mxu1 %v1111_v36 }
 0x456   : > { %1014 = vmatprep.subr.bf16.mxu1 %v1324_v3 }
 0x458   : > { %1003 = vmatmul.mubr.msk.bf16.vlgmr.msra.gmra.mrb[4].mxu1 %vm285_vm0, %v517_v37 }
 0x459   : > { %1018 = vmatprep.mubr.msk.bf16.mxu1 %vm1325_vm1, %v1324_v3  ;;  %1015 = vmatpush3.bf16.msra.mxu1 %v1115_v55 }
 0x45a   : > { %1016 = vmatprep.subr.bf16.mxu1 %v1324_v3 }
 0x45d   : > { %1017 = vmatpush3.bf16.msra.mxu1 %v1117_v2 }
 0x523   : > { %v499_v39 = vpop.f32.mrb[0].mxu1 }
 0x524   : > { %v503_v40 = vadd.f32 0.0001, %v499_v39  ;;  %v997_v41 = vpop.f32.mrb[1].mxu1  ;;  %vm506_vm9 = vcmp.gt.f32.partialorder %v499_v39, 0.0 }
 0x525   : > { %v949_v49 = vsel %vm506_vm9, 1.0, %v1324_v3 }
 0x526   : > { %1122 = vrcp.f32 %v503_v40 }
 0x52b   : > { %v590_v43 = vpop.f32.mrb[4].mxu1 }
 0x52c   : > { %v1004_v44 = vpop.f32.mrb[5].mxu1  ;;  %v591_v57 = vadd.f32 %v951_v56, %v590_v43 }
 0x52d   : > { %v593_v45 = vpop.f32.mrb[6].mxu1 }
 0x52e   : > { %v1005_v47 = vpop.f32.mrb[7].mxu1 }
 0x530   : > { %v1123_v48 = vpop.eup %1122 }
 0x531   : > { %v509_v51 = vmul.f32 %v1123_v48, %v949_v49 }
 0x533   : > { %v516_v52 = vmul.f32 %v515_v50, %v509_v51 }
 0x535   : > { %598 = vperm.xlu1 %1108, %v516_v52  }
 0x5b4   : > { %v599_v58 = vpop.permute.xlu1 %598 }
 0x5b5   : > { %v601_v59 = vmul.f32 %v599_v58, %v591_v57 }
 0x5b7   : > { %v602_v61 = vmax.f32 %v601_v59, 0.0 }
 0x5b9   : > { %v604_v62 = vmul.f32 %v603_v60, %v602_v61 }
 0x5bb   : > { %v605_v0 = vpack.c.bf16 %v604_v62, %v604_v62 }
 0x5bd   : > { %1011 = vmatmul.mubr.msk.bf16.vlgmr.msra.gmra.mrb[4].mxu0 %vm285_vm0, %v605_v0 }
 0x5be   : > { %1023 = vmatpush3.bf16.msra.mxu0 %v1114_v63  ;;  %1026 = vmatprep.mubr.msk.bf16.mxu0 %vm1325_vm1, %v1324_v3 }
 0x5bf   : > { %1024 = vmatprep.subr.bf16.mxu0 %v1324_v3 }
 0x5c2   : > { %1025 = vmatpush3.bf16.msra.mxu0 %v1116_v1 }
 0x5c5   : > { %1027 = vmatmul.mubr.msk.bf16.vlgmr.msra.gmra.mrb[8].mxu0 %vm285_vm0, %v517_v37 }
 0x690   : > { %v659_v5 = vpop.f32.mrb[4].mxu0 }
 0x691   : > { %v660_v6 = vadd.f32 %v955_v4, %v659_v5  ;;  %v1012_v7 = vpop.f32.mrb[5].mxu0 }
 0x692   : > { %v662_v8 = vpop.f32.mrb[6].mxu0 }
 0x693   : > { %v665_v9 = vmul.f32 %v660_v6, %v599_v58  ;;  %v1013_v10 = vpop.f32.mrb[7].mxu0 }
 0x695   : > { %v666_v11 = vpack.c.bf16 %v665_v9, %v665_v9 }
 0x697   : > { %1019 = vmatmul.mubr.msk.bf16.vlgmr.msra.gmra.mrb[8].mxu1 %vm285_vm0, %v666_v11 }
 0x698   : > { %v768_v12 = vpop.f32.mrb[8].mxu0 }
 0x699   : > { %v1028_v13 = vpop.f32.mrb[9].mxu0 }
 0x69a   : > { %v771_v14 = vpop.f32.mrb[10].mxu0 }
 0x69b   : > { %v1029_v3 = vpop.f32.mrb[11].mxu0 }
 0x76a   : > { %v716_v15 = vpop.f32.mrb[8].mxu1 }
 0x76b   : > { %v769_v17 = vadd.f32 %v768_v12, %v716_v15  ;;  %v1020_v18 = vpop.f32.mrb[9].mxu1 }
 0x76c   : > { %v719_v19 = vpop.f32.mrb[10].mxu1 }
 0x76d   : > { %v1021_v20 = vpop.f32.mrb[11].mxu1  ;;  %v778_v21 = vadd.f32 %v965_v16, %v769_v17 }
 0x76f   : > { %v779_v22 = vsel %vm285_vm0, %v778_v21, 0.0 }
 0x770   : > { %780 = vadd.xlane.f32.xlu1 %v779_v22 }
 0x7fd   : > { %v781_v23 = vpop.xlane.xlu1 %780 }
 0x7fe   : > { %v783_v24 = vmul.f32 0.03125, %v781_v23 }
 0x800   : > { %v784_v25 = vsub.f32 %v778_v21, %v783_v24 }
 0x802   : > { %v785_v26 = vmul.f32 %v784_v25, %v784_v25 }
 0x804   : > { %v786_v27 = vsel %vm285_vm0, %v785_v26, 0.0 }
 0x805   : > { %787 = vadd.xlane.f32.xlu0 %v786_v27 }
 0x892   : > { %v788_v28 = vpop.xlane.xlu0 %787 }
 0x893   : > { %v789_v29 = vmul.f32 0.03125, %v788_v28 }
 0x895   : > { %v790_v30 = vadd.f32 1e-05, %v789_v29 }
 0x897   : > { %1124 = vrsqrt.f32 %v790_v30 }
 0x8a1   : > { %v1125_v31 = vpop.eup %1124 }
 0x8a2   : > { %v792_v33 = vmul.f32 %v1125_v31, %v784_v25 }
 0x8a4   : > { %v797_v35 = vmul.f32 %v966_v32, %v792_v33 }
 0x8a6   : > { %v802_v36 = vadd.f32 %v967_v34, %v797_v35 }
 0x8a8   : > { %803 = vst.msk [vmem:[%s276_s7] sm:$0xff] %vm285_vm0, %v802_v36 }
 0x8a9   : > { %1255 = shalt.err (!%p1252_p5)
}
 0x8aa   : > { %s1256_s30 = scalar_lea.hbm %s1628_s6, 128  ;;  %s1260_s26 = scalar_lea.hbm %s1677_s4, 256 }
 0x8ab   : > { %p1257_p3 = scmp.ne.s32.totalorder %s1628_s6, %s1256_s30  ;;  %p1261_p8 = scmp.lt.u32.totalorder %s1628_s6, %s1677_s4 }
 0x8ac   : > { %p1262_p11 = scmp.lt.u32.totalorder %s1260_s26, %s1256_s30  ;;  %p1264_p9 = scmp.lt.u32.totalorder %s1256_s30, %s1628_s6 }
 0x8ad   : > { %p1258_p7 = pnand %p1257_p3, %p1697_p12 }
 0x8ae   : > { %p1263_p0 = por %p1262_p11, %p1261_p8 }
 0x8af   : > { %p1259_p1 = pneg %p1258_p7 }
 0x8b0   : > { %p1265_p2 = por %p1264_p9, %p1263_p0 }
 0x8b2   : > { %p1266_p13 = pnand %p1265_p2, %p1259_p1 }
 0x8b4   : > { %1269 = shalt.err (!%p1266_p13)
}
 0x8b5   : > { %1042 = dma.vmem_to_hbm [thread:$0]  (%p1697_p12), %s1630_s20, 128, %s1628_s6, %s805_s25  }
 0x8b6 PF: > { %s830_s23 = sand.u32 1, %s1304_s15   ;;  %p1698_p6 = scmp.ne.s32.totalorder %s1685_s22, 0 }
 0x8b7   : > { %p1699_p10 = scmp.ge.s32.totalorder %s1316_s18, 2  ;;  %s831_s5 = scalar_lea.sflag [#allocation4], %s830_s23 }
 0x8b9   : > { %p1059_p4 = pnand %p1699_p10, %p1698_p6 }
 0x8bb   : > { %1299 = dma.done.wait (!%p1059_p4), %s831_s5, 128  }
 0x8bc   : > { %1301 = vsyncadd (!%p1059_p4), %s831_s5, 4294967168  ;;  %p21_p5 = scmp.ge.s32.totalorder %s1464_s9, 4   ;;  %s1700_s15 = smov %s1308_s16 }
 0x8bd   : > { %s1701_s16 = smov %s1312_s17  ;;  %s1702_s17 = smov %s1480_s12 }
 0x8be   : > { %s1703_s18 = smov %s1464_s9  ;;  %23 = sbr.rel (!%p21_p5) target bundleno = 10 (0xa), region = 105 }
 0x8c5   :  { %836 = vsyncpa [#allocation3], 1 }
 0x8c6   :  { %838 = vsyncpa [#allocation3 + $0x1], 1 }
 0x8c7   :  { %839 = vsyncpa [#allocation6], 1 }
 0x8c8   :  { %840 = vsyncpa [#allocation9], 1 }
 0x8c9   :  { %842 = vsyncpa [#allocation9 + $0x1], 1 }
 0x8ca   :  { %843 = vsyncpa [#allocation4], 1 }
 0x8cb   :  { %845 = vsyncpa [#allocation4 + $0x1], 1 }

</bundles_post_ra>
